<compile_context>
chip_gen: v5e
topology: v5e:2x2
jax: 0.10.0
libtpu: 0.0.40
codegen_flags: <defaults>
</compile_context>

<pallas_src>
import jax
import jax.numpy as jnp
from jax.experimental import pallas as pl
from jax.experimental.pallas import tpu as pltpu

# ----------------------- model / problem sizes -----------------------
B = 2             # batch
T = 16            # contents_max_len == mel_max_len
C_IN = 8          # content feature dim
HID = 32          # hidden size of features
MEL = 32          # mel channels
HD = 32           # denoiser hidden dim
N_SPK = 4         # number of speakers
DIFF_STEPS = 100  # diffusion timesteps

BT = B * T
SLAB = HID + 3 * MEL          # [feats | x_t | eps_pred | sq_err] -> 128 lanes (lane-dense)
assert SLAB == 128


# ======================= fused Pallas kernel =======================
def _diffsinger_kernel(contents_ref,    # (BT, C_IN)
                       aux_ref,         # (BT, 5)  [pitch, sqrt_acp, sqrt_1m_acp, src_keep, mel_keep]
                       bias_feat_ref,   # (BT, HID) precombined: spk_embed + pshift_term + b_pitch
                       bias_h_ref,      # (BT, HD)  precombined: timestep_embed + b1
                       mel_ref,         # (BT, MEL)
                       noise_ref,       # (BT, MEL)
                       w_text_ref,      # (C_IN, HID)
                       b_text_ref,      # (1, HID)
                       w_pitch_ref,     # (1, HID)
                       w1c_ref,         # (MEL+HID, HD)  = concat([w1, wc], axis=0)
                       w2_ref,          # (HD, MEL)
                       b2_ref,          # (1, MEL)
                       slab_ref,        # out (BT, 128) VMEM: [feats | x_t | eps_pred | sq_err]
                       loss_ref):       # out (1, 1)    SMEM: sum of masked squared error
    pitch    = aux_ref[:, 0:1]
    sac      = aux_ref[:, 1:2]
    s1m      = aux_ref[:, 2:3]
    src_keep = aux_ref[:, 3:4]
    mel_keep = aux_ref[:, 4:5]

    # ---------------- forward_features ----------------
    # text_encoder: Linear(C_IN -> HID), padded frames zeroed (mask applied to the text
    # projection only, matching the reference control flow / previous version).
    text = jnp.dot(contents_ref[...], w_text_ref[...],
                   preferred_element_type=jnp.float32) + b_text_ref[...]
    feats = text * src_keep + bias_feat_ref[...] + pitch * w_pitch_ref[...]

    # ---------------- diffusion.train_step ----------------
    # q_sample
    x_t = sac * mel_ref[...] + s1m * noise_ref[...]

    # denoiser MLP with the two input matmuls fused into one MXU pass
    xin = jnp.concatenate([x_t, feats], axis=-1)                      # (BT, MEL+HID)
    h = jnp.dot(xin, w1c_ref[...], preferred_element_type=jnp.float32) + bias_h_ref[...]
    h = jnp.maximum(h, 0.0)
    eps = jnp.dot(h, w2_ref[...], preferred_element_type=jnp.float32) + b2_ref[...]

    # masked squared error
    sq = ((eps - noise_ref[...]) ** 2) * mel_keep

    # single lane-dense output store + scalar loss numerator
    slab_ref[...] = jnp.concatenate([feats, x_t, eps, sq], axis=-1)   # (BT, 128)
    loss_ref[0, 0] = jnp.sum(sq)


def _diffsinger_fused_call(contents_r, aux, bias_feat_bc, bias_h_bc, mel_r, noise_r,
                           w_text, b_text, w_pitch, w1c, w2, b2):
    vmem = pl.BlockSpec(memory_space=pltpu.MemorySpace.VMEM)
    smem = pl.BlockSpec(memory_space=pltpu.MemorySpace.SMEM)
    slab, loss_sum = pl.pallas_call(
        _diffsinger_kernel,
        out_shape=(
            jax.ShapeDtypeStruct((BT, SLAB), jnp.float32),
            jax.ShapeDtypeStruct((1, 1), jnp.float32),
        ),
        in_specs=[vmem] * 12,
        out_specs=(vmem, smem),
    )(contents_r, aux, bias_feat_bc, bias_h_bc, mel_r, noise_r,
      w_text, b_text, w_pitch, w1c, w2, b2)
    return slab, loss_sum


# ============================ parameter setup (glue) ============================
def init_params(key):
    ks = jax.random.split(key, 10)
    s = 0.02
    return {
        "spk_table": jax.random.normal(ks[0], (N_SPK, HID), jnp.float32) * s,
        "w_text":   jax.random.normal(ks[1], (C_IN, HID), jnp.float32) * s,
        "b_text":   jnp.zeros((1, HID), jnp.float32),
        "w_pitch":  jax.random.normal(ks[2], (1, HID), jnp.float32) * s,
        "b_pitch":  jnp.zeros((1, HID), jnp.float32),
        "w_pshift": jax.random.normal(ks[3], (1, HID), jnp.float32) * s,
        "b_pshift": jnp.zeros((1, HID), jnp.float32),
        "w1": jax.random.normal(ks[4], (MEL, HD), jnp.float32) * s,
        "wc": jax.random.normal(ks[5], (HID, HD), jnp.float32) * s,
        "b1": jnp.zeros((1, HD), jnp.float32),
        "w2": jax.random.normal(ks[6], (HD, MEL), jnp.float32) * s,
        "b2": jnp.zeros((1, MEL), jnp.float32),
    }


def sinusoidal_timestep_embedding(t, dim):
    half = dim // 2
    freqs = jnp.exp(-jnp.log(10000.0) * jnp.arange(half, dtype=jnp.float32) / half)
    args = t.astype(jnp.float32)[:, None] * freqs[None, :]
    return jnp.concatenate([jnp.sin(args), jnp.cos(args)], axis=-1)   # (B, dim)


# ============================ forward (wrapper) ============================
def diffsinger_forward(params, speakers, contents, contents_lens, mel, mel_lens,
                       pitches, pitch_shift, t, noise):
    # speaker_encoder: embedding gather (glue)
    spk_embed = params["spk_table"][speakers]                              # (B, HID)

    # pitch_shift_encoder: Linear(1 -> HID), broadcast over time (glue: per-batch only)
    ps_term = pitch_shift @ params["w_pshift"] + params["b_pshift"]        # (B, HID)

    # everything that is added AFTER the masked text projection, per batch, pre-combined
    bias_feat = spk_embed + ps_term + params["b_pitch"]                    # (B, HID)
    bias_feat_bc = jnp.broadcast_to(bias_feat[:, None, :], (B, T, HID)).reshape(BT, HID)

    # masks (pure length comparisons; also returned, matching get_mask_from_lengths)
    ids = jnp.arange(T, dtype=jnp.int32)[None, :]                          # (1, T)
    src_masks = ids >= contents_lens[:, None]                              # (B, T) True = pad
    mel_masks = ids >= mel_lens[:, None]
    src_keep = (~src_masks).astype(jnp.float32)
    mel_keep = (~mel_masks).astype(jnp.float32)

    # diffusion schedule lookup at sampled timestep t (glue)
    betas = jnp.linspace(1e-4, 0.02, DIFF_STEPS, dtype=jnp.float32)
    alphas_cumprod = jnp.cumprod(1.0 - betas)
    sac_t = jnp.sqrt(alphas_cumprod)[t]                                    # (B,)
    s1m_t = jnp.sqrt(1.0 - alphas_cumprod)[t]                              # (B,)
    temb = sinusoidal_timestep_embedding(t, HD)                            # (B, HD)
    bias_h = temb + params["b1"]                                           # (B, HD)
    bias_h_bc = jnp.broadcast_to(bias_h[:, None, :], (B, T, HD)).reshape(BT, HD)

    # per-row auxiliary scalars: [pitch, sqrt(acp), sqrt(1-acp), src_keep, mel_keep]
    aux = jnp.stack([
        pitches.reshape(B, T),
        jnp.broadcast_to(sac_t[:, None], (B, T)),
        jnp.broadcast_to(s1m_t[:, None], (B, T)),
        src_keep,
        mel_keep,
    ], axis=-1).reshape(BT, 5)

    # fused denoiser input weight: one MXU pass instead of two
    w1c = jnp.concatenate([params["w1"], params["wc"]], axis=0)            # (MEL+HID, HD)

    slab, loss_sum = _diffsinger_fused_call(
        contents.reshape(BT, C_IN), aux, bias_feat_bc, bias_h_bc,
        mel.reshape(BT, MEL), noise.reshape(BT, MEL),
        params["w_text"], params["b_text"], params["w_pitch"],
        w1c, params["w2"], params["b2"])

    feats   = slab[:, 0:HID].reshape(B, T, HID)
    x_t     = slab[:, HID:HID + MEL].reshape(B, T, MEL)
    eps_prd = slab[:, HID + MEL:HID + 2 * MEL].reshape(B, T, MEL)

    denom = jnp.sum(mel_lens).astype(jnp.float32) * MEL
    loss = loss_sum[0, 0] / denom                                          # masked MSE

    return {
        "loss": loss,
        "noise_pred": eps_prd,
        "noise": noise,
        "x_t": x_t,
        "t": t,
        "features": feats,
        "src_masks": src_masks,
        "mel_masks": mel_masks,
    }


# ================================ main ================================
if __name__ == "__main__":
    key = jax.random.PRNGKey(0)
    k_par, k_c, k_mel, k_pit, k_ps, k_t, k_n = jax.random.split(key, 7)

    params = init_params(k_par)

    speakers = jnp.array([0, 3], dtype=jnp.int32)                      # (B,)
    contents = jax.random.normal(k_c, (B, T, C_IN), jnp.float32)       # (B, T, C_IN)
    contents_lens = jnp.array([T, 12], dtype=jnp.int32)                # (B,)
    mel = jax.random.normal(k_mel, (B, T, MEL), jnp.float32)           # (B, T, MEL)
    mel_lens = jnp.array([T, 12], dtype=jnp.int32)                     # (B,)
    pitches = jax.random.uniform(k_pit, (B, T, 1), jnp.float32)        # (B, T, 1)
    pitch_shift = jax.random.normal(k_ps, (B, 1), jnp.float32)         # (B, 1)

    # diffusion.train_step randomness, sampled deterministically here (glue)
    t = jax.random.randint(k_t, (B,), 0, DIFF_STEPS, dtype=jnp.int32)  # (B,)
    noise = jax.random.normal(k_n, (B, T, MEL), jnp.float32)           # (B, T, MEL)

    fwd = jax.jit(diffsinger_forward)
    out = fwd(params, speakers, contents, contents_lens,
              mel, mel_lens, pitches, pitch_shift, t, noise)
    jax.block_until_ready(out["loss"])
    jax.block_until_ready(out["features"])
    print("KERNEL_OK")
</pallas_src>

<mosaic_0001>
module attributes {stable_mosaic.version = 11 : i64} {
  func.func @_diffsinger_kernel(%arg0: memref<32x8xf32, #tpu.memory_space<vmem>>, %arg1: memref<32x5xf32, #tpu.memory_space<vmem>>, %arg2: memref<32x32xf32, #tpu.memory_space<vmem>>, %arg3: memref<32x32xf32, #tpu.memory_space<vmem>>, %arg4: memref<32x32xf32, #tpu.memory_space<vmem>>, %arg5: memref<32x32xf32, #tpu.memory_space<vmem>>, %arg6: memref<8x32xf32, #tpu.memory_space<vmem>>, %arg7: memref<1x32xf32, #tpu.memory_space<vmem>>, %arg8: memref<1x32xf32, #tpu.memory_space<vmem>>, %arg9: memref<64x32xf32, #tpu.memory_space<vmem>>, %arg10: memref<32x32xf32, #tpu.memory_space<vmem>>, %arg11: memref<1x32xf32, #tpu.memory_space<vmem>>, %arg12: memref<32x128xf32, #tpu.memory_space<vmem>>, %arg13: memref<1x1xf32, #tpu.memory_space<smem>>) attributes {dimension_semantics = [], scalar_prefetch = 0 : i64, scratch_operands = 0 : i64, tpu.core_type = #tpu.core_type<tc>} {
    %c0 = arith.constant 0 : index
    %c0_0 = arith.constant 0 : index
    %0 = vector.load %arg1[%c0, %c0_0] : memref<32x5xf32, #tpu.memory_space<vmem>>, vector<32x1xf32>
    %c0_1 = arith.constant 0 : index
    %c1 = arith.constant 1 : index
    %1 = vector.load %arg1[%c0_1, %c1] : memref<32x5xf32, #tpu.memory_space<vmem>>, vector<32x1xf32>
    %c0_2 = arith.constant 0 : index
    %c2 = arith.constant 2 : index
    %2 = vector.load %arg1[%c0_2, %c2] : memref<32x5xf32, #tpu.memory_space<vmem>>, vector<32x1xf32>
    %c0_3 = arith.constant 0 : index
    %c3 = arith.constant 3 : index
    %3 = vector.load %arg1[%c0_3, %c3] : memref<32x5xf32, #tpu.memory_space<vmem>>, vector<32x1xf32>
    %c0_4 = arith.constant 0 : index
    %c4 = arith.constant 4 : index
    %4 = vector.load %arg1[%c0_4, %c4] : memref<32x5xf32, #tpu.memory_space<vmem>>, vector<32x1xf32>
    %c0_5 = arith.constant 0 : index
    %c0_6 = arith.constant 0 : index
    %5 = vector.load %arg0[%c0_5, %c0_6] : memref<32x8xf32, #tpu.memory_space<vmem>>, vector<32x8xf32>
    %c0_7 = arith.constant 0 : index
    %c0_8 = arith.constant 0 : index
    %6 = vector.load %arg6[%c0_7, %c0_8] : memref<8x32xf32, #tpu.memory_space<vmem>>, vector<8x32xf32>
    %cst = arith.constant dense<0.000000e+00> : vector<32x32xf32>
    %7 = tpu.matmul %5, %6, %cst {dimension_numbers = #tpu.dot_dimension_numbers<[1], [0], [0], [1], [0, 0, 1, 1], [], []>} : vector<32x8xf32>, vector<8x32xf32>, vector<32x32xf32> -> vector<32x32xf32>
    %c0_9 = arith.constant 0 : index
    %c0_10 = arith.constant 0 : index
    %8 = vector.load %arg7[%c0_9, %c0_10] : memref<1x32xf32, #tpu.memory_space<vmem>>, vector<1x32xf32>
    %9 = vector.broadcast %8 : vector<1x32xf32> to vector<32x32xf32>
    %10 = arith.addf %7, %9 : vector<32x32xf32>
    %11 = vector.broadcast %3 : vector<32x1xf32> to vector<32x32xf32>
    %12 = arith.mulf %10, %11 : vector<32x32xf32>
    %c0_11 = arith.constant 0 : index
    %c0_12 = arith.constant 0 : index
    %13 = vector.load %arg2[%c0_11, %c0_12] : memref<32x32xf32, #tpu.memory_space<vmem>>, vector<32x32xf32>
    %14 = arith.addf %12, %13 : vector<32x32xf32>
    %c0_13 = arith.constant 0 : index
    %c0_14 = arith.constant 0 : index
    %15 = vector.load %arg8[%c0_13, %c0_14] : memref<1x32xf32, #tpu.memory_space<vmem>>, vector<1x32xf32>
    %16 = vector.broadcast %0 : vector<32x1xf32> to vector<32x32xf32>
    %17 = vector.broadcast %15 : vector<1x32xf32> to vector<32x32xf32>
    %18 = arith.mulf %16, %17 : vector<32x32xf32>
    %19 = arith.addf %14, %18 : vector<32x32xf32>
    %c0_15 = arith.constant 0 : index
    %c0_16 = arith.constant 0 : index
    %20 = vector.load %arg4[%c0_15, %c0_16] : memref<32x32xf32, #tpu.memory_space<vmem>>, vector<32x32xf32>
    %21 = vector.broadcast %1 : vector<32x1xf32> to vector<32x32xf32>
    %22 = arith.mulf %21, %20 : vector<32x32xf32>
    %c0_17 = arith.constant 0 : index
    %c0_18 = arith.constant 0 : index
    %23 = vector.load %arg5[%c0_17, %c0_18] : memref<32x32xf32, #tpu.memory_space<vmem>>, vector<32x32xf32>
    %24 = vector.broadcast %2 : vector<32x1xf32> to vector<32x32xf32>
    %25 = arith.mulf %24, %23 : vector<32x32xf32>
    %26 = arith.addf %22, %25 : vector<32x32xf32>
    %27 = tpu.concatenate %26, %19 in 1 : vector<32x32xf32>, vector<32x32xf32> -> vector<32x64xf32>
    %c0_19 = arith.constant 0 : index
    %c0_20 = arith.constant 0 : index
    %28 = vector.load %arg9[%c0_19, %c0_20] : memref<64x32xf32, #tpu.memory_space<vmem>>, vector<64x32xf32>
    %cst_21 = arith.constant dense<0.000000e+00> : vector<32x32xf32>
    %29 = tpu.matmul %27, %28, %cst_21 {dimension_numbers = #tpu.dot_dimension_numbers<[1], [0], [0], [1], [0, 0, 1, 1], [], []>} : vector<32x64xf32>, vector<64x32xf32>, vector<32x32xf32> -> vector<32x32xf32>
    %c0_22 = arith.constant 0 : index
    %c0_23 = arith.constant 0 : index
    %30 = vector.load %arg3[%c0_22, %c0_23] : memref<32x32xf32, #tpu.memory_space<vmem>>, vector<32x32xf32>
    %31 = arith.addf %29, %30 : vector<32x32xf32>
    %cst_24 = arith.constant 0.000000e+00 : f32
    %32 = vector.broadcast %cst_24 : f32 to vector<32x32xf32>
    %33 = arith.maximumf %31, %32 : vector<32x32xf32>
    %c0_25 = arith.constant 0 : index
    %c0_26 = arith.constant 0 : index
    %34 = vector.load %arg10[%c0_25, %c0_26] : memref<32x32xf32, #tpu.memory_space<vmem>>, vector<32x32xf32>
    %cst_27 = arith.constant dense<0.000000e+00> : vector<32x32xf32>
    %35 = tpu.matmul %33, %34, %cst_27 {dimension_numbers = #tpu.dot_dimension_numbers<[1], [0], [0], [1], [0, 0, 1, 1], [], []>} : vector<32x32xf32>, vector<32x32xf32>, vector<32x32xf32> -> vector<32x32xf32>
    %c0_28 = arith.constant 0 : index
    %c0_29 = arith.constant 0 : index
    %36 = vector.load %arg11[%c0_28, %c0_29] : memref<1x32xf32, #tpu.memory_space<vmem>>, vector<1x32xf32>
    %37 = vector.broadcast %36 : vector<1x32xf32> to vector<32x32xf32>
    %38 = arith.addf %35, %37 : vector<32x32xf32>
    %c0_30 = arith.constant 0 : index
    %c0_31 = arith.constant 0 : index
    %39 = vector.load %arg5[%c0_30, %c0_31] : memref<32x32xf32, #tpu.memory_space<vmem>>, vector<32x32xf32>
    %40 = arith.subf %38, %39 : vector<32x32xf32>
    %41 = arith.mulf %40, %40 : vector<32x32xf32>
    %42 = vector.broadcast %4 : vector<32x1xf32> to vector<32x32xf32>
    %43 = arith.mulf %41, %42 : vector<32x32xf32>
    %44 = tpu.concatenate %19, %26, %38, %43 in 1 : vector<32x32xf32>, vector<32x32xf32>, vector<32x32xf32>, vector<32x32xf32> -> vector<32x128xf32>
    %c0_32 = arith.constant 0 : index
    %c0_33 = arith.constant 0 : index
    %45 = vector.load %arg12[%c0_32, %c0_33] : memref<32x128xf32, #tpu.memory_space<vmem>>, vector<32x128xf32>
    tpu.vector_store %arg12[%c0_32, %c0_33], %44 {strides = array<i32>} : memref<32x128xf32, #tpu.memory_space<vmem>>, vector<32x128xf32>,
    %46 = vector.shape_cast %43 : vector<32x32xf32> to vector<1x32x32xf32>
    %cst_34 = arith.constant dense<0.000000e+00> : vector<1xf32>
    %47 = vector.multi_reduction <add>, %46, %cst_34 [1, 2] : vector<1x32x32xf32> to vector<1xf32>
    %48 = vector.shape_cast %47 : vector<1xf32> to vector<1x1x1xf32>
    %49 = vector.extract %48[0, 0, 0] : f32 from vector<1x1x1xf32>
    %c0_35 = arith.constant 0 : index
    %c0_36 = arith.constant 0 : index
    %50 = memref.load %arg13[%c0_35, %c0_36] : memref<1x1xf32, #tpu.memory_space<smem>>
    memref.store %49, %arg13[%c0_35, %c0_36] : memref<1x1xf32, #tpu.memory_space<smem>>
    return
  }
}

</mosaic_0001>

<bundles_post_ra>
// kernel: diffsinger_forward.1
= control target key start
LH: loop header
LB: loop body
LE: loop exit
PB: predicated region body
PF: predicated region fallthrough
CT: control target
= control target key end

     0   :  { %vm57_vm0 = vcmask 64512   ;;  %v531_v3 = vmov 3   ;;  %v532_v5 = vmov 0   ;;  %s844_s0 = inlined_call_operand.vmem [shape: f32[32,8], index: 0, kind: input, shape index: {}]   ;;  %s845_s1 = inlined_call_operand.vmem [shape: f32[32,5], index: 1, kind: input, shape index: {}]   ;;  %s846_s2 = inlined_call_operand.vmem [shape: f32[32,32], index: 2, kind: input, shape index: {}]   ;;  %s847_s3 = inlined_call_operand.vmem [shape: f32[32,32], index: 3, kind: input, shape index: {}]   ;;  %s848_s4 = inlined_call_operand.vmem [shape: f32[32,32], index: 4, kind: input, shape index: {}]   ;;  %s849_s5 = inlined_call_operand.vmem [shape: f32[32,32], index: 5, kind: input, shape index: {}]   ;;  %s850_s6 = inlined_call_operand.vmem [shape: f32[8,32], index: 6, kind: input, shape index: {}]   ;;  %s851_s7 = inlined_call_operand.vmem [shape: f32[1,32], index: 7, kind: input, shape index: {}]   ;;  %s852_s8 = inlined_call_operand.vmem [shape: f32[1,32], index: 8, kind: input, shape index: {}]   ;;  %s853_s9 = inlined_call_operand.vmem [shape: f32[64,32], index: 9, kind: input, shape index: {}]   ;;  %s854_s10 = inlined_call_operand.vmem [shape: f32[32,32], index: 10, kind: input, shape index: {}]   ;;  %s855_s11 = inlined_call_operand.vmem [shape: f32[1,32], index: 11, kind: input, shape index: {}]   ;;  %s856_s12 = inlined_call_operand.vmem [shape: f32[32,128], index: 12, kind: output, shape index: {0}]   ;;  %s857_s13 = inlined_call_operand.hbm [shape: f32[1,1], index: 13, kind: output, shape index: {1}]  }
   0x1   :  { %v52_v0 = vld [vmem:[%s850_s6] sm:$0xff]  ;;  %500 = vset.pattern.permute.xlu0 %v531_v3  ;;  %v626_v4 = vld [vmem:[%s845_s1 + $0x10] sm:$0xff]  ;;  %501 = vset.pattern.permute.xlu1 %v532_v5 }
   0x2   :  { %v48_v1 = vld [vmem:[%s844_s0] sm:$0xff]  ;;  %85 = vmatpush.msra.mxu0 %v52_v0  ;;  %502 = vset.pattern.permute.xlu2 %v531_v3 }
   0x3   :  { %v619_v2 = vld [vmem:[%s845_s1] sm:$0xff]  ;;  %469 = vmatmul.msk.f32.vlgmr.msra.gmra.mxu0 %vm57_vm0, %v48_v1  ;;  %111 = vperm.xlu2 %502, %v626_v4  }
   0x4   :  { %101 = vperm.xlu0 %500, %v619_v2   ;;  %133 = vperm.xlu1 %501, %v619_v2  }
   0x5   :  { %19 = vsyncpa [#allocation3], 0  ;;  %v49_v6 = vld [vmem:[%s844_s0 + $0x8] sm:$0xff]  ;;  %v50_v8 = vld [vmem:[%s844_s0 + $0x10] sm:$0xff]  ;;  %v533_v10 = vmov 1   ;;  %v534_v12 = vmov 2  }
   0x6   :  { %v636_v7 = vld [vmem:[%s845_s1 + $0x8] sm:$0xff]  ;;  %v648_v9 = vld [vmem:[%s845_s1 + $0x18] sm:$0xff]  ;;  %v515_v13 = vld [vmem:[%s851_s7] ss:$0 sm:$0xff]  ;;  %v535_v20 = vmov 4   ;;  %s536_s7 = smov 32  }
   0x7   :  { %v51_v11 = vld [vmem:[%s844_s0 + $0x18] sm:$0xff]  ;;  %v514_v14 = vld [vmem:[%s852_s8] ss:$0 sm:$0xff]  ;;  %v124_v29 = vld [vmem:[%s846_s2 + $0x8] sm:$0xff]  ;;  %vm227_vm1 = vcmask 261120   ;;  %vm244_vm2 = vcmask 523264  }
   0x8   :  { %v123_v19 = vld [vmem:[%s846_s2] sm:$0xff]  ;;  %v125_v38 = vld [vmem:[%s846_s2 + $0x10] sm:$0xff]  ;;  %v239_v41 = vld [vmem:[%s853_s9 + $0x38] sm:$0xff]  ;;  %s537_s17 = smov 64   ;;  %vm423_vm3 = vcmask 785408   ;;  %s539_s0 = smov [#allocation2]  }
   0x9   :  { %v238_v42 = vld [vmem:[%s853_s9 + $0x30] sm:$0xff]  ;;  %481 = vmatpush.msra.mxu3 %v239_v41  ;;  %265 = vmatpush.msra.mxu1 %v239_v41  ;;  %v237_v44 = vld [vmem:[%s853_s9 + $0x28] sm:$0xff]  ;;  %v236_v46 = vld [vmem:[%s853_s9 + $0x20] sm:$0xff] }
   0xa   :  { %v235_v49 = vld [vmem:[%s853_s9 + $0x18] sm:$0xff]  ;;  %v234_v54 = vld [vmem:[%s853_s9 + $0x10] sm:$0xff]  ;;  %v233_v58 = vld [vmem:[%s853_s9 + $0x8] sm:$0xff] }
   0xb   :  { %470 = vmatmul.msk.f32.gmra.mxu0 %vm57_vm0, %v49_v6  ;;  %503 = vset.pattern.permute.xlu2 %v532_v5  ;;  %v126_v52 = vld [vmem:[%s846_s2 + $0x18] sm:$0xff]  ;;  %v726_v60 = vld [vmem:[%s849_s5 + $0x8] sm:$0xff]  ;;  %v159_v0 = vld [vmem:[%s848_s4] sm:$0xff] }
   0xc   :  { %106 = vperm.xlu0 %500, %v636_v7   ;;  %137 = vperm.xlu1 %501, %v636_v7   ;;  %v160_v62 = vld [vmem:[%s848_s4 + $0x8] sm:$0xff]  ;;  %v737_v1 = vld [vmem:[%s849_s5] sm:$0xff] }
   0xd   :  { %141 = vperm.xlu2 %503, %v626_v4   ;;  %482 = vmatpush.msra.mxu3 %v238_v42 }
   0xe   :  { %266 = vmatpush.msra.mxu1 %v238_v42  ;;  %v241_v42 = vld [vmem:[%s847_s3 + $0x8] sm:$0xff] }
   0xf   :  { %483 = vmatpush.msra.mxu3 %v237_v44 }
  0x10   :  { %267 = vmatpush.msra.mxu1 %v237_v44 }
  0x11   :  { %484 = vmatpush.msra.mxu3 %v236_v46 }
  0x12   :  { %268 = vmatpush.msra.mxu1 %v236_v46 }
  0x13   :  { %471 = vmatmul.msk.f32.gmra.mxu0 %vm57_vm0, %v50_v8  ;;  %485 = vmatpush.msra.mxu3 %v235_v49 }
  0x14   :  { %116 = vperm.xlu0 %500, %v648_v9   ;;  %145 = vperm.xlu1 %501, %v648_v9  }
  0x15   :  { %504 = vset.pattern.permute.xlu2 %v533_v10  ;;  %269 = vmatpush.msra.mxu1 %v235_v49 }
  0x16   :  { %164 = vperm.xlu2 %504, %v619_v2   ;;  %486 = vmatpush.msra.mxu3 %v234_v54 }
  0x17   :  { %270 = vmatpush.msra.mxu1 %v234_v54 }
  0x18   :  { %487 = vmatpush.msra.mxu3 %v233_v58 }
  0x19   :  { %271 = vmatpush.msra.mxu1 %v233_v58 }
  0x1b   :  { %472 = vmatmul.msk.f32.gmra.mxu0 %vm57_vm0, %v51_v11 }
  0x1c   :  { %505 = vset.pattern.permute.xlu0 %v534_v12  ;;  %506 = vset.pattern.permute.xlu1 %v533_v10 }
  0x1d   :  { %188 = vperm.xlu0 %505, %v619_v2   ;;  %168 = vperm.xlu1 %506, %v636_v7  }
  0x1e   :  { %507 = vset.pattern.permute.xlu2 %v534_v12 }
  0x1f   :  { %192 = vperm.xlu2 %507, %v636_v7  }
  0x25   :  { %508 = vset.pattern.permute.xlu0 %v533_v10  ;;  %509 = vset.pattern.permute.xlu1 %v534_v12 }
  0x26   :  { %172 = vperm.xlu0 %508, %v626_v4  }
  0x2e   :  { %513 = vset.pattern.permute.xlu0 %v535_v20 }
  0x5d   :  { %v112_v24 = vpop.permute.xlu2 %111 }
  0x67   :  { %v142_v36 = vpop.permute.xlu2 %141 }
  0x68   :  { %v153_v40 = vmul.f32 %v514_v14, %v142_v36  ;;  %v291_v36 = vld [vmem:[%s854_s10 + $0x8] sm:$0xff] }
  0x70   :  { %v165_v55 = vpop.permute.xlu2 %164 }
  0x71   :  { %v179_v6 = vmul.f32 %v165_v55, %v159_v0  ;;  %v516_v55 = vld [vmem:[%s855_s11] ss:$0 sm:$0xff] }
  0x76   :  { %v102_v15 = vpop.permute.xlu0 %101  ;;  %v134_v18 = vpop.permute.xlu1 %133 }
  0x77   :  { %v151_v21 = vmul.f32 %v514_v14, %v134_v18 }
  0x79   :  { %v193_v61 = vpop.permute.xlu2 %192 }
  0x7a   :  { %v204_v3 = vmul.f32 %v193_v61, %v726_v60 }
  0x7e   :  { %v107_v28 = vpop.permute.xlu0 %106  ;;  %v138_v31 = vpop.permute.xlu1 %137 }
  0x7f   :  { %v152_v32 = vmul.f32 %v514_v14, %v138_v31 }
  0x80   :  { %v87_v16 = vpop.f32.mrf.mxu0 }
  0x81   :  { %v88_v17 = vadd.f32 %v515_v13, %v87_v16 }
  0x83   :  { %v119_v22 = vmul.f32 %v102_v15, %v88_v17  ;;  %v185_v17 = vld [vmem:[%s849_s5 + $0x10] sm:$0xff] }
  0x85   :  { %v127_v23 = vadd.f32 %v123_v19, %v119_v22 }
  0x86   :  { %v117_v50 = vpop.permute.xlu0 %116  ;;  %v146_v51 = vpop.permute.xlu1 %145 }
  0x87   :  { %v672_v25 = vadd.f32 %v151_v21, %v127_v23  ;;  %v154_v56 = vmul.f32 %v514_v14, %v146_v51  ;;  %v161_v14 = vld [vmem:[%s848_s4 + $0x10] sm:$0xff]  ;;  %v766_v23 = vld [vmem:[%s849_s5 + $0x18] sm:$0xff]  ;;  %s457_s5 = sshll.u32 %s857_s13, 4  ;;  %s458_s5 = int_to_ptr.hbm [resolvable:$true] %s457_s5 }
  0x88   :  { %v90_v26 = vpop.f32.mrf.mxu0  ;;  %v243_v51 = vld [vmem:[%s847_s3 + $0x18] sm:$0xff] }
  0x89   :  { %v91_v27 = vadd.f32 %v515_v13, %v90_v26  ;;  %215 = vrot.lane.b32.xlu1 %v672_v25, %s536_s7  ;;  %v162_v26 = vld [vmem:[%s848_s4 + $0x18] sm:$0xff] }
  0x8b   :  { %v120_v30 = vmul.f32 %v107_v28, %v91_v27 }
  0x8d   :  { %v128_v33 = vadd.f32 %v124_v29, %v120_v30 }
  0x8f   :  { %v679_v34 = vadd.f32 %v152_v32, %v128_v33  ;;  %v169_v63 = vpop.permute.xlu1 %168  ;;  %v293_v33 = vld [vmem:[%s854_s10 + $0x18] sm:$0xff] }
  0x90   :  { %v93_v35 = vpop.f32.mrf.mxu0  ;;  %v180_v5 = vmul.f32 %v169_v63, %v160_v62  ;;  %322 = vmatpush.msra.mxu2 %v293_v33 }
  0x91   :  { %v94_v37 = vadd.f32 %v515_v13, %v93_v35  ;;  %196 = vperm.xlu1 %509, %v626_v4   ;;  %217 = vrot.lane.b32.xlu2 %v679_v34, %s536_s7  ;;  %v292_v35 = vld [vmem:[%s854_s10 + $0x10] sm:$0xff] }
  0x92   :  { %323 = vmatpush.msra.mxu2 %v292_v35 }
  0x93   :  { %v121_v39 = vmul.f32 %v112_v24, %v94_v37  ;;  %v290_v37 = vld [vmem:[%s854_s10] sm:$0xff] }
  0x94   :  { %324 = vmatpush.msra.mxu2 %v291_v36 }
  0x95   :  { %v129_v43 = vadd.f32 %v125_v38, %v121_v39  ;;  %v240_v38 = vld [vmem:[%s847_s3] sm:$0xff] }
  0x96   :  { %325 = vmatpush.msra.mxu2 %v290_v37 }
  0x97   :  { %v696_v45 = vadd.f32 %v153_v40, %v129_v43 }
  0x98   :  { %v96_v47 = vpop.f32.mrf.mxu0 }
  0x99   :  { %v97_v48 = vadd.f32 %v515_v13, %v96_v47  ;;  %510 = vset.pattern.permute.xlu1 %v533_v10  ;;  %219 = vrot.lane.b32.xlu2 %v696_v45, %s536_s7  ;;  %v208_v10 = vadd.f32 %v204_v3, %v180_v5  ;;  %v242_v47 = vld [vmem:[%s847_s3 + $0x10] sm:$0xff]  ;;  %s538_s3 = smov 96  }
  0x9a   :  { %176 = vperm.xlu1 %510, %v648_v9  }
  0x9b   :  { %v122_v53 = vmul.f32 %v117_v50, %v97_v48 }
  0x9d   :  { %v130_v57 = vadd.f32 %v126_v52, %v122_v53 }
  0x9f   :  { %v716_v59 = vadd.f32 %v154_v56, %v130_v57 }
  0xa1   :  { %200 = vperm.xlu2 %507, %v648_v9   ;;  %221 = vrot.lane.b32.xlu0 %v716_v59, %s536_s7 }
  0xa2   :  { %511 = vset.pattern.permute.xlu1 %v535_v20 }
  0xa3   :  { %348 = vperm.xlu1 %511, %v619_v2   ;;  %v189_v2 = vpop.permute.xlu0 %188 }
  0xa4   :  { %v203_v8 = vmul.f32 %v189_v2, %v737_v1 }
  0xa6   :  { %v207_v11 = vadd.f32 %v203_v8, %v179_v6 }
  0xa9   :  { %356 = vperm.xlu0 %513, %v626_v4   ;;  %512 = vset.pattern.permute.xlu2 %v535_v20  ;;  %v232_v4 = vld [vmem:[%s853_s9] sm:$0xff] }
  0xaa   :  { %352 = vperm.xlu2 %512, %v636_v7   ;;  %488 = vmatpush.msra.mxu3 %v232_v4 }
  0xab   :  { %360 = vperm.xlu1 %511, %v648_v9   ;;  %272 = vmatpush.msra.mxu1 %v232_v4  ;;  %v173_v15 = vpop.permute.xlu0 %172 }
  0xac   :  { %v181_v18 = vmul.f32 %v173_v15, %v161_v14 }
  0xb1   :  { %373 = vrot.lane.b32.xlu0 %v208_v10, %s536_s7 }
  0xb3   :  { %371 = vrot.lane.b32.xlu1 %v207_v11, %s536_s7 }
  0xeb   :  { %v218_v7 = vpop.permute.xlu2 %217 }
  0xec   :  { %v229_v12 = vsel %vm227_vm1, %v208_v10, %v218_v7 }
  0xed   :  { %474 = vmatmul.msk.f32.vlgmr.msra.gmra.mxu3 %vm244_vm2, %v229_v12 }
  0xf3   :  { %v220_v16 = vpop.permute.xlu2 %219 }
  0xfb   :  { %v216_v9 = vpop.permute.xlu1 %215  ;;  %v201_v24 = vpop.permute.xlu2 %200 }
  0xfc   :  { %v228_v13 = vsel %vm227_vm1, %v207_v11, %v216_v9  ;;  %v206_v28 = vmul.f32 %v201_v24, %v766_v23 }
  0xfd   :  { %473 = vmatmul.msk.f32.vlgmr.msra.gmra.mxu1 %vm244_vm2, %v228_v13 }
 0x103   :  { %v197_v19 = vpop.permute.xlu1 %196 }
 0x104   :  { %v205_v20 = vmul.f32 %v197_v19, %v185_v17  ;;  %v353_v10 = vpop.permute.xlu2 %352 }
 0x106   :  { %v209_v21 = vadd.f32 %v205_v20, %v181_v18 }
 0x108   :  { %375 = vrot.lane.b32.xlu1 %v209_v21, %s536_s7  ;;  %v230_v22 = vsel %vm227_vm1, %v209_v21, %v220_v16 }
 0x109   :  { %475 = vmatmul.msk.f32.gmra.mxu3 %vm244_vm2, %v230_v22 }
 0x10c   :  { %v177_v27 = vpop.permute.xlu1 %176 }
 0x10d   :  { %v182_v29 = vmul.f32 %v177_v27, %v162_v26 }
 0x10f   :  { %v210_v30 = vadd.f32 %v206_v28, %v182_v29 }
 0x111   :  { %377 = vrot.lane.b32.xlu0 %v210_v30, %s536_s7 }
 0x113   :  { %v222_v31 = vpop.permute.xlu0 %221 }
 0x114   :  { %v231_v32 = vsel %vm227_vm1, %v210_v30, %v222_v31 }
 0x115   :  { %476 = vmatmul.msk.f32.gmra.mxu3 %vm244_vm2, %v231_v32  ;;  %v349_v8 = vpop.permute.xlu1 %348 }
 0x11b   :  { %v357_v12 = vpop.permute.xlu0 %356 }
 0x11d   :  { %v361_v18 = vpop.permute.xlu1 %360 }
 0x125   :  { %v372_v26 = vpop.permute.xlu1 %371 }
 0x126   :  { %v415_v32 = vsel %vm227_vm1, %v672_v25, %v372_v26 }
 0x170   :  { %v277_v43 = vpop.f32.mrf.mxu3 }
 0x171   :  { %v278_v44 = vadd.f32 %v277_v43, %v241_v42 }
 0x173   :  { %v287_v46 = vmax.f32 %v278_v44, 0.0 }
 0x17a   :  { %v274_v39 = vpop.f32.mrf.mxu1  ;;  %v376_v27 = vpop.permute.xlu1 %375 }
 0x17b   :  { %v275_v40 = vadd.f32 %v274_v39, %v240_v38 }
 0x17d   :  { %v286_v41 = vmax.f32 %v275_v40, 0.0 }
 0x17f   :  { %477 = vmatmul.msk.f32.vlgmr.msra.gmra.mxu2 %vm227_vm1, %v286_v41  ;;  %v417_v41 = vsel %vm227_vm1, %v696_v45, %v376_v27 }
 0x187   :  { %478 = vmatmul.msk.f32.gmra.mxu2 %vm227_vm1, %v287_v46 }
 0x18c   :  { %v280_v48 = vpop.f32.mrf.mxu3 }
 0x18d   :  { %v281_v49 = vadd.f32 %v280_v48, %v242_v47 }
 0x18f   :  { %v288_v50 = vmax.f32 %v281_v49, 0.0 }
 0x191   :  { %479 = vmatmul.msk.f32.gmra.mxu2 %vm227_vm1, %v288_v50 }
 0x198   :  { %v283_v52 = vpop.f32.mrf.mxu3 }
 0x199   :  { %v284_v53 = vadd.f32 %v283_v52, %v243_v51 }
 0x19b   :  { %v289_v54 = vmax.f32 %v284_v53, 0.0 }
 0x19d   :  { %480 = vmatmul.msk.f32.gmra.mxu2 %vm227_vm1, %v289_v54 }
 0x202   :  { %v327_v56 = vpop.f32.mrf.mxu2 }
 0x203   :  { %v328_v57 = vadd.f32 %v516_v55, %v327_v56 }
 0x205   :  { %387 = vrot.lane.b32.xlu1 %v328_v57, %s537_s17  ;;  %v339_v63 = vsub.f32 %v328_v57, %v737_v1 }
 0x207   :  { %v343_v3 = vmul.f32 %v339_v63, %v339_v63 }
 0x209   :  { %v363_v11 = vmul.f32 %v349_v8, %v343_v3 }
 0x20a   :  { %v330_v58 = vpop.f32.mrf.mxu2 }
 0x20b   :  { %v331_v61 = vadd.f32 %v516_v55, %v330_v58 }
 0x20d   :  { %389 = vrot.lane.b32.xlu0 %v331_v61, %s537_s17  ;;  %v340_v2 = vsub.f32 %v331_v61, %v726_v60  ;;  %v432_v60 = vsel %vm227_vm1, %v363_v11, 0.0 }
 0x20f   :  { %v344_v6 = vmul.f32 %v340_v2, %v340_v2 }
 0x211   :  { %v364_v7 = vmul.f32 %v353_v10, %v344_v6 }
 0x213   :  { %v433_v1 = vsel %vm227_vm1, %v364_v7, 0.0 }
 0x214   :  { %v333_v62 = vpop.f32.mrf.mxu2  ;;  %v434_v19 = vadd.f32 %v433_v1, %v432_v60 }
 0x215   :  { %v334_v0 = vadd.f32 %v516_v55, %v333_v62 }
 0x217   :  { %391 = vrot.lane.b32.xlu1 %v334_v0, %s537_s17  ;;  %v341_v5 = vsub.f32 %v334_v0, %v185_v17 }
 0x219   :  { %v345_v4 = vmul.f32 %v341_v5, %v341_v5 }
 0x21b   :  { %v365_v14 = vmul.f32 %v357_v12, %v345_v4 }
 0x21d   :  { %v435_v17 = vsel %vm227_vm1, %v365_v14, 0.0 }
 0x21e   :  { %v436_v21 = vadd.f32 %v435_v17, %v434_v19 }
 0x21f   :  { %403 = vrot.lane.b32.xlu1 %v363_v11, %s538_s3 }
 0x220   :  { %v336_v9 = vpop.f32.mrf.mxu2 }
 0x221   :  { %v337_v13 = vadd.f32 %v516_v55, %v336_v9 }
 0x223   :  { %v342_v15 = vsub.f32 %v337_v13, %v766_v23  ;;  %393 = vrot.lane.b32.xlu0 %v337_v13, %s537_s17  ;;  %v374_v23 = vpop.permute.xlu0 %373 }
 0x224   :  { %v416_v45 = vsel %vm227_vm1, %v679_v34, %v374_v23 }
 0x225   :  { %v346_v16 = vmul.f32 %v342_v15, %v342_v15 }
 0x227   :  { %v366_v20 = vmul.f32 %v361_v18, %v346_v16 }
 0x229   :  { %409 = vrot.lane.b32.xlu1 %v366_v20, %s538_s3  ;;  %v437_v22 = vsel %vm227_vm1, %v366_v20, 0.0 }
 0x22a   :  { %v438_v24 = vadd.f32 %v437_v22, %v436_v21 }
 0x22b   :  { %407 = vrot.lane.b32.xlu0 %v365_v14, %s538_s3  ;;  %v378_v29 = vpop.permute.xlu0 %377 }
 0x22c   :  { %439 = vadd.xlane.f32.xlu2 %v438_v24  ;;  %v418_v38 = vsel %vm227_vm1, %v716_v59, %v378_v29 }
 0x244   :  { %405 = vrot.lane.b32.xlu2 %v364_v7, %s538_s3 }
 0x277   :  { %v388_v28 = vpop.permute.xlu1 %387 }
 0x278   :  { %v419_v33 = vsel %vm244_vm2, %v415_v32, %v388_v28 }
 0x27f   :  { %v390_v31 = vpop.permute.xlu0 %389 }
 0x280   :  { %v420_v50 = vsel %vm244_vm2, %v416_v45, %v390_v31 }
 0x289   :  { %v392_v30 = vpop.permute.xlu1 %391 }
 0x28a   :  { %v421_v42 = vsel %vm244_vm2, %v417_v41, %v392_v30 }
 0x291   :  { %v404_v35 = vpop.permute.xlu1 %403 }
 0x292   :  { %v424_v36 = vsel %vm423_vm3, %v419_v33, %v404_v35 }
 0x293   :  { %428 = vst [vmem:[%s856_s12] sm:$0xff] %v424_v36 }
 0x295   :  { %v394_v37 = vpop.permute.xlu0 %393 }
 0x296   :  { %v422_v39 = vsel %vm244_vm2, %v418_v38, %v394_v37 }
 0x29b   :  { %v410_v40 = vpop.permute.xlu1 %409 }
 0x29c   :  { %v427_v25 = vsel %vm423_vm3, %v422_v39, %v410_v40 }
 0x29d   :  { %431 = vst [vmem:[%s856_s12 + $0x18] sm:$0xff] %v427_v25  ;;  %v408_v43 = vpop.permute.xlu0 %407 }
 0x29e   :  { %v426_v44 = vsel %vm423_vm3, %v421_v42, %v408_v43 }
 0x29f   :  { %430 = vst [vmem:[%s856_s12 + $0x10] sm:$0xff] %v426_v44  ;;  %v440_v59 = vpop.xlane.xlu2 %439 }
 0x2a0   :  { %v441_v46 = vrot.slane %v440_v59, 4 }
 0x2a2   :  { %v442_v47 = vadd.f32 %v441_v46, %v440_v59 }
 0x2a4   :  { %v443_v48 = vrot.slane %v442_v47, 2 }
 0x2a6   :  { %v444_v49 = vadd.f32 %v443_v48, %v442_v47 }
 0x2a7   :  { %v406_v51 = vpop.permute.xlu2 %405 }
 0x2a8   :  { %v425_v52 = vsel %vm423_vm3, %v420_v50, %v406_v51  ;;  %v445_v53 = vrot.slane %v444_v49, 1 }
 0x2a9   :  { %429 = vst [vmem:[%s856_s12 + $0x8] sm:$0xff] %v425_v52 }
 0x2aa   :  { %v446_v54 = vadd.f32 %v445_v53, %v444_v49 }
 0x2ac   :  { %489 = vpush %v446_v54 }
 0x2dd   :  { %s490_s25 = spop %489 }
 0x2de   :  { %449 = sst [smem:[#allocation2]] %s490_s25 }
 0x2df   :  { %460 = dma.smem_to_hbm %s539_s0, 16, %s458_s5, [#allocation3]  }
 0x2e0   :  { %529 = dma.done.wait [#allocation3], 16  }
 0x2e1   :  { %530 = vsyncadd [#allocation3], 4294967280 }
 0x2e2   :  { %467 = sfence }
 0x2e3   :  { %468 = vsyncpa [#allocation3], 1 }

</bundles_post_ra>
